<compile_context>
chip_gen: v7x
topology: tpu7x:2x2x1
jax: 0.10.0
libtpu: 0.0.40
codegen_flags: <defaults>
</compile_context>

<pallas_src>
import functools
import math

import jax
import jax.numpy as jnp
from jax.experimental import pallas as pl
from jax.experimental.pallas import tpu as pltpu


def _dense(x3, w2):
    """(TB, N, K) @ (K, Hp) -> (TB, N, Hp) on the MXU.

    Prefers a single flattened 2-D matmul (one big MXU op, weights loaded once)
    when the reshape is layout-free (N multiple of 8); otherwise a batched
    einsum (Mosaic lowers it to per-batch matmuls).
    """
    tb, n, k = x3.shape
    hp = w2.shape[1]
    if n % 8 == 0:
        y2 = jnp.dot(x3.reshape(tb * n, k), w2,
                     preferred_element_type=jnp.float32)
        return y2.reshape(tb, n, hp)
    w3 = jnp.broadcast_to(w2, (tb,) + w2.shape)
    return jnp.einsum("bnk,bkh->bnh", x3, w3,
                      preferred_element_type=jnp.float32)


def gcn_kernel(feat_ref, adj_ref, w_ref, b_ref, out_ref, *, propagate_first):
    # Refs (per grid step):
    #   feat (TB, N, F), adj (TB, N, N), w (F, Hp), b (1, Hp), out (TB, N, Hp)
    adj_c = jnp.maximum(adj_ref[...], 0.0)                        # clip(min=0)

    # Degree with the self-loop folded in (+1); >= 1 so rsqrt is safe.
    d_is = jax.lax.rsqrt(jnp.sum(adj_c, axis=-1, keepdims=True) + 1.0)  # (TB,N,1)

    feat = feat_ref[...]                                          # (TB,N,F)
    w = w_ref[...]                                                # (F,Hp)

    if propagate_first:
        # F < H: N^2 matmul carries the narrow F dim, feature transform last.
        q = d_is * feat                                           # s * X
        t = jnp.einsum("bij,bjf->bif", adj_c, q,
                       preferred_element_type=jnp.float32) + q    # A_c q + q
        t = d_is * t                                              # A_hat X
        out = _dense(t, w)                                        # (A_hat X) W
    else:
        # H <= F: transform features first, then propagate.
        pre = _dense(feat, w)                                     # X W
        p = d_is * pre
        out = d_is * (jnp.einsum("bij,bjh->bih", adj_c, p,
                                 preferred_element_type=jnp.float32) + p)

    out = out + b_ref[...]                                        # (1,Hp) broadcast
    out_ref[...] = jnp.tanh(out).astype(out_ref.dtype)


def _round_up(x, m):
    return (x + m - 1) // m * m


def _choose_batch_tile(B, N, F, Hp, budget_bytes=8 * 1024 * 1024):
    """Largest divisor of B whose double-buffered block footprint fits budget."""
    itemsize = 4

    def fits(tb):
        per_step = tb * (N * F + N * N + N * Hp) * itemsize
        return 2 * per_step <= budget_bytes   # in/out blocks are double buffered

    tb = B
    while tb > 1 and not (B % tb == 0 and fits(tb)):
        tb -= 1
    return tb


def graph_convolution(feat, adj, weights, bias):
    """feat: (B,N,F), adj: (B,N,N), weights: (F,H), bias: (H,) -> (B,N,H)."""
    B, N, F = feat.shape
    H = weights.shape[1]

    # Lane-dense output: zero-pad H up to a multiple of 128 (padded columns
    # compute tanh(0) and are sliced off afterwards).
    Hp = _round_up(H, 128)
    w_p = jnp.zeros((F, Hp), jnp.float32).at[:, :H].set(weights.astype(jnp.float32))
    b_p = jnp.zeros((1, Hp), jnp.float32).at[:, :H].set(bias.astype(jnp.float32))

    TB = _choose_batch_tile(B, N, F, Hp)
    grid = (B // TB,)

    kernel = functools.partial(gcn_kernel, propagate_first=(F < H))

    out = pl.pallas_call(
        kernel,
        out_shape=jax.ShapeDtypeStruct((B, N, Hp), jnp.float32),
        grid_spec=pltpu.PrefetchScalarGridSpec(
            num_scalar_prefetch=0,
            grid=grid,
            in_specs=[
                pl.BlockSpec((TB, N, F), lambda i: (i, 0, 0)),
                pl.BlockSpec((TB, N, N), lambda i: (i, 0, 0)),
                pl.BlockSpec((F, Hp), lambda i: (0, 0)),     # resident weights
                pl.BlockSpec((1, Hp), lambda i: (0, 0)),     # resident bias
            ],
            out_specs=pl.BlockSpec((TB, N, Hp), lambda i: (i, 0, 0)),
        ),
        compiler_params=pltpu.CompilerParams(
            dimension_semantics=("parallel",)),
    )(feat.astype(jnp.float32), adj.astype(jnp.float32), w_p, b_p)

    return out[:, :, :H]


if __name__ == "__main__":
    # Small shapes consistent with the module's forward.
    B, N, NFEAT, HIDDEN = 2, 16, 8, 32

    key = jax.random.PRNGKey(0)
    k_feat, k_adj, k_w, k_b = jax.random.split(key, 4)

    feat = jax.random.normal(k_feat, (B, N, NFEAT), dtype=jnp.float32)
    # adjacency with positive and negative entries (clip handles negatives)
    adj = jax.random.normal(k_adj, (B, N, N), dtype=jnp.float32)
    adj = 0.5 * (adj + jnp.swapaxes(adj, 1, 2))   # symmetrize

    # Deterministic parameter init mirroring reset_parameters():
    # uniform(-stdv, stdv) with stdv = 1/sqrt(hidden_dim)
    stdv = 1.0 / math.sqrt(HIDDEN)
    gcn_weights = jax.random.uniform(
        k_w, (NFEAT, HIDDEN), dtype=jnp.float32, minval=-stdv, maxval=stdv)
    gcn_bias = jax.random.uniform(
        k_b, (HIDDEN,), dtype=jnp.float32, minval=-stdv, maxval=stdv)

    out = graph_convolution(feat, adj, gcn_weights, gcn_bias)
    out = jax.block_until_ready(out)

    # Pure-JAX reference: the exact original (un-fused) formulation.
    a = jnp.maximum(adj, 0.0) + jnp.eye(N, dtype=jnp.float32)[None]
    d = jnp.power(jnp.sum(a, axis=-1), -0.5)
    norm_a = d[:, :, None] * a * d[:, None, :]
    ref = jnp.tanh(norm_a @ (feat @ gcn_weights) + gcn_bias[None, None, :])

    assert out.shape == (B, N, HIDDEN)
    assert jnp.allclose(out, ref, atol=1e-5, rtol=1e-5), \
        float(jnp.max(jnp.abs(out - ref)))

    print("KERNEL_OK")
</pallas_src>

<mosaic_0001>
module attributes {stable_mosaic.version = 11 : i64} {
  func.func @gcn_kernel(%arg0: i32, %arg1: memref<2x16x8xf32, #tpu.memory_space<vmem>>, %arg2: memref<2x16x16xf32, #tpu.memory_space<vmem>>, %arg3: memref<8x128xf32, #tpu.memory_space<vmem>>, %arg4: memref<1x128xf32, #tpu.memory_space<vmem>>, %arg5: memref<2x16x128xf32, #tpu.memory_space<vmem>>) attributes {dimension_semantics = [#tpu.dimension_semantics<parallel>], iteration_bounds = array<i64: 1>, scalar_prefetch = 0 : i64, scratch_operands = 0 : i64, tpu.core_type = #tpu.core_type<tc>, window_params = [{transform_indices = @transform_0, window_bounds = array<i64: 2, 16, 8>}, {transform_indices = @transform_1, window_bounds = array<i64: 2, 16, 16>}, {pipeline_mode = #tpu.pipeline_mode<synchronous>, transform_indices = @transform_2, window_bounds = array<i64: 8, 128>}, {pipeline_mode = #tpu.pipeline_mode<synchronous>, transform_indices = @transform_3, window_bounds = array<i64: 1, 128>}, {transform_indices = @transform_4, window_bounds = array<i64: 2, 16, 128>}]} {
    %c0 = arith.constant 0 : index
    %c0_0 = arith.constant 0 : index
    %c0_1 = arith.constant 0 : index
    %0 = vector.load %arg2[%c0, %c0_0, %c0_1] : memref<2x16x16xf32, #tpu.memory_space<vmem>>, vector<2x16x16xf32>
    %cst = arith.constant 0.000000e+00 : f32
    %1 = vector.broadcast %cst : f32 to vector<2x16x16xf32>
    %2 = arith.maximumf %0, %1 : vector<2x16x16xf32>
    %cst_2 = arith.constant dense<0.000000e+00> : vector<2x16xf32>
    %3 = vector.multi_reduction <add>, %2, %cst_2 [2] : vector<2x16x16xf32> to vector<2x16xf32>
    %4 = vector.shape_cast %3 : vector<2x16xf32> to vector<2x16x1xf32>
    %cst_3 = arith.constant 1.000000e+00 : f32
    %5 = vector.broadcast %cst_3 : f32 to vector<2x16x1xf32>
    %6 = arith.addf %4, %5 : vector<2x16x1xf32>
    %7 = math.rsqrt %6 : vector<2x16x1xf32>
    %c0_4 = arith.constant 0 : index
    %c0_5 = arith.constant 0 : index
    %c0_6 = arith.constant 0 : index
    %8 = vector.load %arg1[%c0_4, %c0_5, %c0_6] : memref<2x16x8xf32, #tpu.memory_space<vmem>>, vector<2x16x8xf32>
    %c0_7 = arith.constant 0 : index
    %c0_8 = arith.constant 0 : index
    %9 = vector.load %arg3[%c0_7, %c0_8] : memref<8x128xf32, #tpu.memory_space<vmem>>, vector<8x128xf32>
    %10 = vector.broadcast %7 : vector<2x16x1xf32> to vector<2x16x8xf32>
    %11 = arith.mulf %10, %8 : vector<2x16x8xf32>
    "tpu.trace_start"() <{level = 10 : i32, message = "bij,bjf->bif"}> : () -> ()
    %cst_9 = arith.constant dense<0.000000e+00> : vector<2x16x8xf32>
    %12 = tpu.matmul %2, %11, %cst_9 {dimension_numbers = #tpu.dot_dimension_numbers<[2], [1], [1], [2], [0, 0, 0, 1, 1, 2], [0], [0]>} : vector<2x16x16xf32>, vector<2x16x8xf32>, vector<2x16x8xf32> -> vector<2x16x8xf32>
    "tpu.trace_stop"() : () -> ()
    %13 = arith.addf %12, %11 : vector<2x16x8xf32>
    %14 = vector.broadcast %7 : vector<2x16x1xf32> to vector<2x16x8xf32>
    %15 = arith.mulf %14, %13 : vector<2x16x8xf32>
    %16 = vector.shape_cast %15 : vector<2x16x8xf32> to vector<32x8xf32>
    %cst_10 = arith.constant dense<0.000000e+00> : vector<32x128xf32>
    %17 = tpu.matmul %16, %9, %cst_10 {dimension_numbers = #tpu.dot_dimension_numbers<[1], [0], [0], [1], [0, 0, 1, 1], [], []>} : vector<32x8xf32>, vector<8x128xf32>, vector<32x128xf32> -> vector<32x128xf32>
    %18 = vector.shape_cast %17 : vector<32x128xf32> to vector<2x16x128xf32>
    %c0_11 = arith.constant 0 : index
    %c0_12 = arith.constant 0 : index
    %19 = vector.load %arg4[%c0_11, %c0_12] : memref<1x128xf32, #tpu.memory_space<vmem>>, vector<1x128xf32>
    %20 = vector.shape_cast %19 : vector<1x128xf32> to vector<1x1x128xf32>
    %21 = vector.broadcast %20 : vector<1x1x128xf32> to vector<2x16x128xf32>
    %22 = arith.addf %18, %21 : vector<2x16x128xf32>
    %23 = math.tanh %22 : vector<2x16x128xf32>
    %c0_13 = arith.constant 0 : index
    %c0_14 = arith.constant 0 : index
    %c0_15 = arith.constant 0 : index
    %24 = vector.load %arg5[%c0_13, %c0_14, %c0_15] : memref<2x16x128xf32, #tpu.memory_space<vmem>>, vector<2x16x128xf32>
    tpu.vector_store %arg5[%c0_13, %c0_14, %c0_15], %23 {strides = array<i32>} : memref<2x16x128xf32, #tpu.memory_space<vmem>>, vector<2x16x128xf32>,
    return
  }
  func.func @transform_0(%arg0: i32) -> (i32, i32, i32) {
    %c0_i32 = arith.constant 0 : i32
    %c0_i32_0 = arith.constant 0 : i32
    %c0_i32_1 = arith.constant 0 : i32
    return %arg0, %c0_i32, %c0_i32_0 : i32, i32, i32
  }
  func.func @transform_1(%arg0: i32) -> (i32, i32, i32) {
    %c0_i32 = arith.constant 0 : i32
    %c0_i32_0 = arith.constant 0 : i32
    %c0_i32_1 = arith.constant 0 : i32
    return %arg0, %c0_i32, %c0_i32_0 : i32, i32, i32
  }
  func.func @transform_2(%arg0: i32) -> (i32, i32) {
    %c0_i32 = arith.constant 0 : i32
    %c0_i32_0 = arith.constant 0 : i32
    %c0_i32_1 = arith.constant 0 : i32
    return %c0_i32, %c0_i32_0 : i32, i32
  }
  func.func @transform_3(%arg0: i32) -> (i32, i32) {
    %c0_i32 = arith.constant 0 : i32
    %c0_i32_0 = arith.constant 0 : i32
    %c0_i32_1 = arith.constant 0 : i32
    return %c0_i32, %c0_i32_0 : i32, i32
  }
  func.func @transform_4(%arg0: i32) -> (i32, i32, i32) {
    %c0_i32 = arith.constant 0 : i32
    %c0_i32_0 = arith.constant 0 : i32
    %c0_i32_1 = arith.constant 0 : i32
    return %arg0, %c0_i32, %c0_i32_0 : i32, i32, i32
  }
}

</mosaic_0001>

<bundles_post_ra>
// kernel: tpu_custom_call.1
= control target key start
LH: loop header
LB: loop body
LE: loop exit
PB: predicated region body
PF: predicated region fallthrough
CT: control target
= control target key end

     0   :  { %vm26_vm0 = vcmask 130048   ;;  %s528_s0 = inlined_call_operand.vmem [shape: f32[2,16,8], index: 0, kind: input, shape index: {}]   ;;  %s529_s1 = inlined_call_operand.vmem [shape: f32[2,16,16], index: 1, kind: input, shape index: {}]   ;;  %s530_s2 = inlined_call_operand.vmem [shape: f32[8,128], index: 2, kind: input, shape index: {}]   ;;  %s531_s3 = inlined_call_operand.vmem [shape: f32[1,128], index: 3, kind: input, shape index: {}]   ;;  %s532_s4 = inlined_call_operand.hbm [shape: f32[2,16,128], index: 4, kind: output, shape index: {}]  }
   0x1   :  { %v20_v0 = vld [vmem:[%s529_s1 + $0x10] sm:$0xff]  ;;  %v18_v1 = vld [vmem:[%s529_s1] sm:$0xff]  ;;  %v21_v2 = vld [vmem:[%s529_s1 + $0x18] sm:$0xff] }
   0x2   :  { %v24_v3 = vmax.f32 %v20_v0, 0.0  ;;  %v22_v4 = vmax.f32 %v18_v1, 0.0  ;;  %v25_v5 = vmax.f32 %v21_v2, 0.0  ;;  %v19_v6 = vld [vmem:[%s529_s1 + $0x8] sm:$0xff] }
   0x3   :  { %9 = vsyncpa [#allocation3], 0  ;;  %v23_v7 = vmax.f32 %v19_v6, 0.0  ;;  %v47_v21 = vld [vmem:[%s528_s0] sm:$0xff]  ;;  %v48_v23 = vld [vmem:[%s528_s0 + $0x8] sm:$0xff]  ;;  %vm222_vm1 = vcmask 64512  }
   0x4   :  { %v33_v8 = vsel %vm26_vm0, %v24_v3, 0.0  ;;  %v27_v9 = vsel %vm26_vm0, %v22_v4, 0.0  ;;  %381 = vmatprep.mubr.msk.f32.mxu1 %vm26_vm0, %v22_v4  ;;  %v36_v10 = vsel %vm26_vm0, %v25_v5, 0.0  ;;  %v49_v24 = vld [vmem:[%s528_s0 + $0x10] sm:$0xff]  ;;  %v50_v25 = vld [vmem:[%s528_s0 + $0x18] sm:$0xff]  ;;  %v51_v34 = vld [vmem:[%s530_s2] sm:$0xff] }
   0x5   :  { %34 = vadd.xlane.f32.xlu1 %v33_v8  ;;  %28 = vadd.xlane.f32.xlu0 %v27_v9  ;;  %v30_v11 = vsel %vm26_vm0, %v23_v7, 0.0  ;;  %v363_v47 = vld [vmem:[%s531_s3] ss:$0 sm:$0xff]  ;;  %s450_s6 = smov [#allocation2]  }
   0x6   :  { %391 = vmatprep.subr.mxu0 %v51_v34  ;;  %s344_s7 = sshll.u32 %s450_s6, 4  ;;  %s345_s7 = int_to_ptr.vmem [resolvable:$true] %s344_s7 }
   0x7   :  { %392 = vmatpush3.msra.mxu0 %v51_v34  ;;  %s426_s3 = scalar_lea.vmem %s345_s7, 512  ;;  %p431_p1 = scmp.lt.s32.totalorder %s345_s7, %s345_s7 }
   0x8   :  { %p427_p0 = scmp.ne.s32.totalorder %s345_s7, %s426_s3  ;;  %p432_p2 = scmp.lt.s32.totalorder %s426_s3, %s426_s3 }
   0x9   :  { %37 = vadd.xlane.f32.xlu1 %v36_v10  ;;  %31 = vadd.xlane.f32.xlu0 %v30_v11 }
   0xa   :  { %p433_p3 = por %p432_p2, %p431_p1 }
   0xc   :  { %p434_p4 = pnand %p433_p3, %p427_p0 }
  0x92   :  { %v35_v12 = vpop.xlane.xlu1 %34  ;;  %v29_v13 = vpop.xlane.xlu0 %28 }
  0x93   :  { %v41_v14 = vadd.f32 1.0, %v35_v12  ;;  %v39_v15 = vadd.f32 1.0, %v29_v13 }
  0x95   :  { %410 = vrsqrt.f32 %v41_v14 }
  0x96   :  { %v38_v16 = vpop.xlane.xlu1 %37  ;;  %v32_v17 = vpop.xlane.xlu0 %31  ;;  %412 = vrsqrt.f32 %v39_v15 }
  0x97   :  { %v42_v18 = vadd.f32 1.0, %v38_v16  ;;  %v40_v19 = vadd.f32 1.0, %v32_v17 }
  0x99   :  { %414 = vrsqrt.f32 %v42_v18 }
  0x9a   :  { %416 = vrsqrt.f32 %v40_v19 }
  0x9f   :  { %v411_v20 = vpop.eup %410 }
  0xa0   :  { %v413_v22 = vpop.eup %412  ;;  %v54_v30 = vmul.f32 %v411_v20, %v49_v24 }
  0xa1   :  { %v52_v28 = vmul.f32 %v413_v22, %v47_v21 }
  0xa3   :  { %v415_v26 = vpop.eup %414 }
  0xa4   :  { %v417_v27 = vpop.eup %416  ;;  %v55_v31 = vmul.f32 %v415_v26, %v50_v25 }
  0xa5   :  { %v53_v29 = vmul.f32 %v417_v27, %v48_v23 }
  0xa6   :  { %v403_v33 = vpack.c.bf16 %v55_v31, %v54_v30 }
  0xa7   :  { %v399_v32 = vpack.c.bf16 %v53_v29, %v52_v28 }
  0xa9   :  { %400 = vmatprep.subr.bf16.mxu1 %v399_v32 }
  0xaa   :  { %402 = vmatpush3.bf16.msra.mxu1 %v399_v32 }
  0xab   :  { %404 = vmatprep.subr.bf16.mxu1 %v403_v33 }
  0xad   :  { %382 = vmatmul.mubr.msk.f32.vlgmr.msra.gmra.mrb[0].mxu1 %vm26_vm0, %v23_v7 }
  0xae   :  { %406 = vmatpush3.bf16.msra.mxu1 %v403_v33  ;;  %388 = vmatprep.mubr.msk.f32.mxu1 %vm26_vm0, %v24_v3 }
  0xb1   :  { %389 = vmatmul.mubr.msk.f32.vlgmr.msra.gmra.mrb[2].mxu1 %vm26_vm0, %v25_v5 }
 0x180   :  { %v383_v35 = vpop.f32.mrb[0].mxu1 }
 0x181   :  { %v134_v36 = vadd.f32 %v383_v35, %v53_v29  ;;  %v128_v37 = vpop.f32.mrb[1].mxu1 }
 0x182   :  { %v129_v38 = vadd.f32 %v128_v37, %v52_v28 }
 0x183   :  { %v219_v41 = vmul.f32 %v417_v27, %v134_v36 }
 0x184   :  { %v390_v39 = vpop.f32.mrb[2].mxu1  ;;  %v218_v40 = vmul.f32 %v413_v22, %v129_v38 }
 0x185   :  { %v215_v42 = vadd.f32 %v390_v39, %v55_v31  ;;  %v209_v43 = vpop.f32.mrb[3].mxu1 }
 0x186   :  { %v210_v44 = vadd.f32 %v209_v43, %v54_v30  ;;  %393 = vmatprep.mubr.msk.f32.mxu0 %vm222_vm1, %v218_v40 }
 0x187   :  { %394 = vmatmul.mubr.msk.f32.vlgmr.msra.gmra.mrb[0].mxu0 %vm222_vm1, %v219_v41  ;;  %v221_v46 = vmul.f32 %v415_v26, %v215_v42 }
 0x188   :  { %v220_v45 = vmul.f32 %v411_v20, %v210_v44 }
 0x18a   :  { %396 = vmatprep.mubr.msk.f32.mxu0 %vm222_vm1, %v220_v45 }
 0x18b   :  { %397 = vmatmul.mubr.msk.f32.gmra.mrb[2].mxu0 %vm222_vm1, %v221_v46 }
 0x25a   :  { %v395_v48 = vpop.f32.mrb[0].mxu0 }
 0x25b   :  { %v328_v49 = vadd.f32 %v395_v48, %v363_v47  ;;  %v301_v50 = vpop.f32.mrb[1].mxu0 }
 0x25c   :  { %v327_v51 = vadd.f32 %v363_v47, %v301_v50 }
 0x25d   :  { %418 = vtanh.f32 %v328_v49 }
 0x25e   :  { %420 = vtanh.f32 %v327_v51  ;;  %v398_v52 = vpop.f32.mrb[2].mxu0 }
 0x25f   :  { %v330_v53 = vadd.f32 %v398_v52, %v363_v47  ;;  %v311_v54 = vpop.f32.mrb[3].mxu0 }
 0x260   :  { %v329_v55 = vadd.f32 %v363_v47, %v311_v54 }
 0x261   :  { %422 = vtanh.f32 %v330_v53 }
 0x262   :  { %424 = vtanh.f32 %v329_v55 }
 0x267   :  { %v419_v56 = vpop.eup %418 }
 0x268   :  { %v421_v57 = vpop.eup %420  ;;  %336 = vst [vmem:[#allocation2 + $0x8] sm:$0xff] %v419_v56 }
 0x269   :  { %335 = vst [vmem:[#allocation2] sm:$0xff] %v421_v57 }
 0x26b   :  { %v423_v58 = vpop.eup %422 }
 0x26c   :  { %v425_v59 = vpop.eup %424  ;;  %338 = vst [vmem:[#allocation2 + $0x18] sm:$0xff] %v423_v58 }
 0x26d   :  { %337 = vst [vmem:[#allocation2 + $0x10] sm:$0xff] %v425_v59 }
 0x26e   :  { %437 = shalt.err (!%p434_p4)
}
 0x26f   :  { %s438_s10 = scalar_lea.hbm %s532_s4, 512 }
 0x270   :  { %p439_p5 = scmp.ne.s32.totalorder %s532_s4, %s438_s10  ;;  %p442_p6 = scmp.lt.u32.totalorder %s438_s10, %s532_s4 }
 0x272   :  { %p444_p7 = pnand %p442_p6, %p439_p5 }
 0x274   :  { %447 = shalt.err (!%p444_p7)
}
 0x275   :  { %s451_s15 = smov 128   ;;  %s452_s16 = smov 8  }
 0x276   :  { %350 = dma.vmem_to_hbm [thread:$0]  %s345_s7, 512, %s532_s4, [#allocation3], %s451_s15, %s451_s15, %s452_s16  }
 0x277   :  { %448 = dma.done.wait [#allocation3], 512  }
 0x278   :  { %449 = vsyncadd [#allocation3], 4294966784 }
 0x279   :  { %354 = vsyncpa [#allocation3], 1 }

</bundles_post_ra>
